<compile_context>
chip_gen: v5e
topology: v5e:2x2
jax: 0.10.0
libtpu: 0.0.40
codegen_flags: <defaults>
</compile_context>

<pallas_src>
import jax
import jax.numpy as jnp
from jax.experimental import pallas as pl
from jax.experimental.pallas import tpu as pltpu

LANE = 128
SUBLANE = 16  # bf16 sublane tile (also satisfies the f32 requirement of 8)


def _round_up(x, m):
    return (x + m - 1) // m * m


def autoencoder_kernel(
    x_ref,      # (TB, D)   f32   batch tile (pipelined)
    w1e_ref,    # (D, h1)   bf16  encoder.linear1 weight (resident)
    b1e_ref,    # (1, h1)   f32
    wmid_ref,   # (h1, h1)  bf16  fused encoder.linear2 @ decoder.linear1
    bmid_ref,   # (1, h1)   f32
    w2d_ref,    # (h1, D)   bf16  decoder.linear2 weight (resident)
    b2d_ref,    # (1, D)    f32
    out_ref,    # (TB, D)   bf16 (or f32)
):
    # Cast the f32 input tile to bf16 in VMEM: keeps the HBM stream at a single
    # f32 read of x (no wrapper-side cast pass) while using the native MXU path.
    x = x_ref[...].astype(jnp.bfloat16)

    # Encoder linear1 + ReLU (f32 accumulation on the MXU).
    h = jnp.dot(x, w1e_ref[...], preferred_element_type=jnp.float32) + b1e_ref[...]
    h = jnp.maximum(h, 0.0)

    # Fused (encoder.linear2 -> decoder.linear1) + ReLU.  Exact: the PyTorch
    # module applies no nonlinearity between the two latent linears.
    d = jnp.dot(h.astype(jnp.bfloat16), wmid_ref[...],
                preferred_element_type=jnp.float32) + bmid_ref[...]
    d = jnp.maximum(d, 0.0)

    # Decoder linear2 + sigmoid.  exp and approx-reciprocal both go to the EUP
    # slot; min() keeps the exact [0, 1] sigmoid range despite the approx recip.
    o = jnp.dot(d.astype(jnp.bfloat16), w2d_ref[...],
                preferred_element_type=jnp.float32) + b2d_ref[...]
    s = pl.reciprocal(1.0 + jnp.exp(-o), approx=True)
    out_ref[...] = jnp.minimum(s, 1.0).astype(out_ref.dtype)


def _device_kind():
    try:
        return jax.devices()[0].device_kind.lower()
    except Exception:
        return ""


def autoencoder_forward(x_nchw, params, *, out_dtype=jnp.bfloat16):
    """x_nchw: (B, 1, 28, 28) float32 -> (B, 1, 28, 28) `out_dtype` in [0, 1]."""
    B = x_nchw.shape[0]
    D = x_nchw.shape[1] * x_nchw.shape[2] * x_nchw.shape[3]   # 784

    w1e, b1e, w2e, b2e, w1d, b1d, w2d, b2d = params
    h1 = w1e.shape[1]

    # ---- generation-dependent tiling (HBM-bound: bytes first, then overhead) ----
    kind = _device_kind()
    is_v7x = "7" in kind                       # v7x: 64 MiB VMEM, 2 TCs/chip
    desired_tb = 2048                          # amortizes ~0.35 us per grid step
    vmem_limit = (48 << 20) if is_v7x else (64 << 20)

    tb = min(desired_tb, _round_up(B, SUBLANE))
    tb = _round_up(tb, SUBLANE)
    b_pad = _round_up(B, tb)
    num_tiles = b_pad // tb

    # ---- input: flatten only.  No column pad, no dtype cast (kernel reads f32
    # and casts in VMEM); batch rows padded only when B % tb != 0. ----
    x_flat = x_nchw.reshape(B, D)
    if b_pad != B:
        x_flat = jnp.zeros((b_pad, D), x_flat.dtype).at[:B].set(x_flat)

    # ---- tiny-weight precompute: fuse the two un-activated latent linears ----
    w_mid = w2e @ w1d                          # (h1, h1), algebraically exact
    b_mid = b2e @ w1d + b1d                    # (1, h1)

    w1e_b = w1e.astype(jnp.bfloat16)
    w_mid_b = w_mid.astype(jnp.bfloat16)
    w2d_b = w2d.astype(jnp.bfloat16)

    def resident(a):
        # Same block every grid step -> fetched once, stays resident in VMEM.
        return pl.BlockSpec(a.shape, lambda i: (0, 0))

    # v7x: shard the batch grid across both TensorCores.  Other generations (and
    # single-tile grids) keep plain "parallel" (safe no-op fallback).
    if is_v7x and num_tiles >= 2:
        dim_sem = (pltpu.CORE_PARALLEL,)
    else:
        dim_sem = ("parallel",)

    out_bytes = jnp.dtype(out_dtype).itemsize
    flops = 2 * b_pad * (D * h1 + h1 * h1 + h1 * D)
    bytes_accessed = (
        b_pad * D * 4                          # x (f32 read)
        + b_pad * D * out_bytes                # output write
        + (D * h1 + h1 * h1 + h1 * D) * 2      # bf16 weights
        + (h1 + h1 + D) * 4                    # f32 biases
    )

    out_p = pl.pallas_call(
        autoencoder_kernel,
        out_shape=jax.ShapeDtypeStruct((b_pad, D), out_dtype),
        grid=(num_tiles,),
        in_specs=[
            pl.BlockSpec((tb, D), lambda i: (i, 0)),       # x batch tile
            resident(w1e_b), resident(b1e),
            resident(w_mid_b), resident(b_mid),
            resident(w2d_b), resident(b2d),
        ],
        out_specs=pl.BlockSpec((tb, D), lambda i: (i, 0)),
        compiler_params=pltpu.CompilerParams(
            dimension_semantics=dim_sem,
            vmem_limit_bytes=vmem_limit,
        ),
        cost_estimate=pl.CostEstimate(
            flops=flops,
            transcendentals=b_pad * D,
            bytes_accessed=bytes_accessed,
        ),
    )(x_flat, w1e_b, b1e, w_mid_b, b_mid, w2d_b, b2d)

    out = out_p[:B] if b_pad != B else out_p   # contiguous row-slice only
    return out.reshape(-1, 1, 28, 28)


def reference_forward(x_nchw, params):
    """Pure-JAX f32 reference matching the PyTorch module exactly."""
    w1e, b1e, w2e, b2e, w1d, b1d, w2d, b2d = params
    x = x_nchw.reshape(x_nchw.shape[0], -1)
    h = jnp.maximum(x @ w1e + b1e, 0.0)
    z = h @ w2e + b2e
    d = jnp.maximum(z @ w1d + b1d, 0.0)
    o = 1.0 / (1.0 + jnp.exp(-(d @ w2d + b2d)))
    return o.reshape(-1, 1, 28, 28)


def init_params(key, input_dims, h1_dims, latent_dims):
    """Deterministic PyTorch-Linear-style uniform init (U[-1/sqrt(fan_in), +])."""
    def linear(key, fan_in, fan_out):
        kw, kb = jax.random.split(key)
        bound = 1.0 / jnp.sqrt(fan_in)
        # Stored as (fan_in, fan_out) so the kernel can do x @ W directly
        # (equivalent to PyTorch's x @ weight.T with weight (fan_out, fan_in)).
        w = jax.random.uniform(kw, (fan_in, fan_out), jnp.float32, -bound, bound)
        b = jax.random.uniform(kb, (1, fan_out), jnp.float32, -bound, bound)
        return w, b

    k1, k2, k3, k4 = jax.random.split(key, 4)
    w1e, b1e = linear(k1, input_dims, h1_dims)     # encoder.linear1
    w2e, b2e = linear(k2, h1_dims, latent_dims)    # encoder.linear2
    w1d, b1d = linear(k3, latent_dims, h1_dims)    # decoder.linear1
    w2d, b2d = linear(k4, h1_dims, input_dims)     # decoder.linear2
    return (w1e, b1e, w2e, b2e, w1d, b1d, w2d, b2d)


if __name__ == "__main__":
    INPUT_DIMS = 28 * 28   # 784, required by the decoder's reshape to (-1,1,28,28)
    H1_DIMS = 32
    LATENT_DIMS = 8
    BATCH = 2

    key = jax.random.PRNGKey(0)
    kx, kp = jax.random.split(key)

    x = jax.random.uniform(kx, (BATCH, 1, 28, 28), jnp.float32)
    params = init_params(kp, INPUT_DIMS, H1_DIMS, LATENT_DIMS)

    fwd = jax.jit(autoencoder_forward)
    out = fwd(x, params)
    out = jax.block_until_ready(out)

    assert out.shape == (BATCH, 1, 28, 28), out.shape
    out_f32 = out.astype(jnp.float32)
    assert bool(jnp.all(jnp.isfinite(out_f32)))
    assert bool(jnp.all((out_f32 >= 0.0) & (out_f32 <= 1.0)))   # sigmoid range

    # Tolerance vs. f32 reference (bf16 operands/output + fused latent linears).
    ref = reference_forward(x, params)
    err = float(jnp.max(jnp.abs(out_f32 - ref)))
    assert err < 3e-2, err

    print("KERNEL_OK")
</pallas_src>

<mosaic_0001>
module attributes {stable_mosaic.version = 11 : i64} {
  func.func @autoencoder_kernel(%arg0: i32, %arg1: memref<16x784xf32, #tpu.memory_space<vmem>>, %arg2: memref<784x32xbf16, #tpu.memory_space<vmem>>, %arg3: memref<1x32xf32, #tpu.memory_space<vmem>>, %arg4: memref<32x32xbf16, #tpu.memory_space<vmem>>, %arg5: memref<1x32xf32, #tpu.memory_space<vmem>>, %arg6: memref<32x784xbf16, #tpu.memory_space<vmem>>, %arg7: memref<1x784xf32, #tpu.memory_space<vmem>>, %arg8: memref<16x784xbf16, #tpu.memory_space<vmem>>) attributes {dimension_semantics = [#tpu.dimension_semantics<parallel>], iteration_bounds = array<i64: 1>, scalar_prefetch = 0 : i64, scratch_operands = 0 : i64, tpu.core_type = #tpu.core_type<tc>, window_params = [{transform_indices = @transform_0, window_bounds = array<i64: 16, 784>}, {pipeline_mode = #tpu.pipeline_mode<synchronous>, transform_indices = @transform_1, window_bounds = array<i64: 784, 32>}, {pipeline_mode = #tpu.pipeline_mode<synchronous>, transform_indices = @transform_2, window_bounds = array<i64: 1, 32>}, {pipeline_mode = #tpu.pipeline_mode<synchronous>, transform_indices = @transform_3, window_bounds = array<i64: 32, 32>}, {pipeline_mode = #tpu.pipeline_mode<synchronous>, transform_indices = @transform_4, window_bounds = array<i64: 1, 32>}, {pipeline_mode = #tpu.pipeline_mode<synchronous>, transform_indices = @transform_5, window_bounds = array<i64: 32, 784>}, {pipeline_mode = #tpu.pipeline_mode<synchronous>, transform_indices = @transform_6, window_bounds = array<i64: 1, 784>}, {transform_indices = @transform_7, window_bounds = array<i64: 16, 784>}]} {
    %c0 = arith.constant 0 : index
    %c0_0 = arith.constant 0 : index
    %0 = vector.load %arg1[%c0, %c0_0] : memref<16x784xf32, #tpu.memory_space<vmem>>, vector<16x784xf32>
    %1 = arith.truncf %0 : vector<16x784xf32> to vector<16x784xbf16>
    %c0_1 = arith.constant 0 : index
    %c0_2 = arith.constant 0 : index
    %2 = vector.load %arg2[%c0_1, %c0_2] : memref<784x32xbf16, #tpu.memory_space<vmem>>, vector<784x32xbf16>
    %cst = arith.constant dense<0.000000e+00> : vector<16x32xf32>
    %3 = tpu.matmul %1, %2, %cst {dimension_numbers = #tpu.dot_dimension_numbers<[1], [0], [0], [1], [0, 0, 1, 1], [], []>} : vector<16x784xbf16>, vector<784x32xbf16>, vector<16x32xf32> -> vector<16x32xf32>
    %c0_3 = arith.constant 0 : index
    %c0_4 = arith.constant 0 : index
    %4 = vector.load %arg3[%c0_3, %c0_4] : memref<1x32xf32, #tpu.memory_space<vmem>>, vector<1x32xf32>
    %5 = vector.broadcast %4 : vector<1x32xf32> to vector<16x32xf32>
    %6 = arith.addf %3, %5 : vector<16x32xf32>
    %cst_5 = arith.constant 0.000000e+00 : f32
    %7 = vector.broadcast %cst_5 : f32 to vector<16x32xf32>
    %8 = arith.maximumf %6, %7 : vector<16x32xf32>
    %9 = arith.truncf %8 : vector<16x32xf32> to vector<16x32xbf16>
    %c0_6 = arith.constant 0 : index
    %c0_7 = arith.constant 0 : index
    %10 = vector.load %arg4[%c0_6, %c0_7] : memref<32x32xbf16, #tpu.memory_space<vmem>>, vector<32x32xbf16>
    %cst_8 = arith.constant dense<0.000000e+00> : vector<16x32xf32>
    %11 = tpu.matmul %9, %10, %cst_8 {dimension_numbers = #tpu.dot_dimension_numbers<[1], [0], [0], [1], [0, 0, 1, 1], [], []>} : vector<16x32xbf16>, vector<32x32xbf16>, vector<16x32xf32> -> vector<16x32xf32>
    %c0_9 = arith.constant 0 : index
    %c0_10 = arith.constant 0 : index
    %12 = vector.load %arg5[%c0_9, %c0_10] : memref<1x32xf32, #tpu.memory_space<vmem>>, vector<1x32xf32>
    %13 = vector.broadcast %12 : vector<1x32xf32> to vector<16x32xf32>
    %14 = arith.addf %11, %13 : vector<16x32xf32>
    %cst_11 = arith.constant 0.000000e+00 : f32
    %15 = vector.broadcast %cst_11 : f32 to vector<16x32xf32>
    %16 = arith.maximumf %14, %15 : vector<16x32xf32>
    %17 = arith.truncf %16 : vector<16x32xf32> to vector<16x32xbf16>
    %c0_12 = arith.constant 0 : index
    %c0_13 = arith.constant 0 : index
    %18 = vector.load %arg6[%c0_12, %c0_13] : memref<32x784xbf16, #tpu.memory_space<vmem>>, vector<32x784xbf16>
    %cst_14 = arith.constant dense<0.000000e+00> : vector<16x784xf32>
    %19 = tpu.matmul %17, %18, %cst_14 {dimension_numbers = #tpu.dot_dimension_numbers<[1], [0], [0], [1], [0, 0, 1, 1], [], []>} : vector<16x32xbf16>, vector<32x784xbf16>, vector<16x784xf32> -> vector<16x784xf32>
    %c0_15 = arith.constant 0 : index
    %c0_16 = arith.constant 0 : index
    %20 = vector.load %arg7[%c0_15, %c0_16] : memref<1x784xf32, #tpu.memory_space<vmem>>, vector<1x784xf32>
    %21 = vector.broadcast %20 : vector<1x784xf32> to vector<16x784xf32>
    %22 = arith.addf %19, %21 : vector<16x784xf32>
    %cst_17 = arith.constant 0.000000e+00 : f32
    %23 = vector.broadcast %cst_17 : f32 to vector<16x784xf32>
    %24 = arith.subf %23, %22 : vector<16x784xf32>
    %25 = math.exp %24 : vector<16x784xf32>
    %cst_18 = arith.constant 1.000000e+00 : f32
    %26 = vector.broadcast %cst_18 : f32 to vector<16x784xf32>
    %27 = arith.addf %26, %25 : vector<16x784xf32>
    %28 = tpu.reciprocal %27 {approx = true} : vector<16x784xf32> -> vector<16x784xf32>
    %cst_19 = arith.constant 1.000000e+00 : f32
    %29 = vector.broadcast %cst_19 : f32 to vector<16x784xf32>
    %30 = arith.minimumf %28, %29 : vector<16x784xf32>
    %31 = arith.truncf %30 : vector<16x784xf32> to vector<16x784xbf16>
    %c0_20 = arith.constant 0 : index
    %c0_21 = arith.constant 0 : index
    %32 = vector.load %arg8[%c0_20, %c0_21] : memref<16x784xbf16, #tpu.memory_space<vmem>>, vector<16x784xbf16>
    tpu.vector_store %arg8[%c0_20, %c0_21], %31 {strides = array<i32>} : memref<16x784xbf16, #tpu.memory_space<vmem>>, vector<16x784xbf16>,
    return
  }
  func.func @transform_0(%arg0: i32) -> (i32, i32) {
    %c0_i32 = arith.constant 0 : i32
    %c0_i32_0 = arith.constant 0 : i32
    return %arg0, %c0_i32 : i32, i32
  }
  func.func @transform_1(%arg0: i32) -> (i32, i32) {
    %c0_i32 = arith.constant 0 : i32
    %c0_i32_0 = arith.constant 0 : i32
    %c0_i32_1 = arith.constant 0 : i32
    return %c0_i32, %c0_i32_0 : i32, i32
  }
  func.func @transform_2(%arg0: i32) -> (i32, i32) {
    %c0_i32 = arith.constant 0 : i32
    %c0_i32_0 = arith.constant 0 : i32
    %c0_i32_1 = arith.constant 0 : i32
    return %c0_i32, %c0_i32_0 : i32, i32
  }
  func.func @transform_3(%arg0: i32) -> (i32, i32) {
    %c0_i32 = arith.constant 0 : i32
    %c0_i32_0 = arith.constant 0 : i32
    %c0_i32_1 = arith.constant 0 : i32
    return %c0_i32, %c0_i32_0 : i32, i32
  }
  func.func @transform_4(%arg0: i32) -> (i32, i32) {
    %c0_i32 = arith.constant 0 : i32
    %c0_i32_0 = arith.constant 0 : i32
    %c0_i32_1 = arith.constant 0 : i32
    return %c0_i32, %c0_i32_0 : i32, i32
  }
  func.func @transform_5(%arg0: i32) -> (i32, i32) {
    %c0_i32 = arith.constant 0 : i32
    %c0_i32_0 = arith.constant 0 : i32
    %c0_i32_1 = arith.constant 0 : i32
    return %c0_i32, %c0_i32_0 : i32, i32
  }
  func.func @transform_6(%arg0: i32) -> (i32, i32) {
    %c0_i32 = arith.constant 0 : i32
    %c0_i32_0 = arith.constant 0 : i32
    %c0_i32_1 = arith.constant 0 : i32
    return %c0_i32, %c0_i32_0 : i32, i32
  }
  func.func @transform_7(%arg0: i32) -> (i32, i32) {
    %c0_i32 = arith.constant 0 : i32
    %c0_i32_0 = arith.constant 0 : i32
    return %arg0, %c0_i32 : i32, i32
  }
}

</mosaic_0001>

<bundles_post_ra>
// kernel: autoencoder_forward.1
= control target key start
LH: loop header
LB: loop body
LE: loop exit
PB: predicated region body
PF: predicated region fallthrough
CT: control target
= control target key end

     0   :  { %vm444_vm0 = vcmask 130048   ;;  %vm569_vm1 = vcmask 261120   ;;  %vm890_vm2 = vcmask 125952   ;;  %s1663_s1 = inlined_call_operand.vmem [shape: bf16[784,32], index: 1, kind: input, shape index: {}]   ;;  %s1664_s2 = inlined_call_operand.vmem [shape: f32[1,32], index: 2, kind: input, shape index: {}]   ;;  %s1665_s0 = inlined_call_operand.vmem [shape: f32[16,784], index: 0, kind: input, shape index: {}]   ;;  %s1666_s4 = inlined_call_operand.vmem [shape: f32[1,32], index: 4, kind: input, shape index: {}]   ;;  %s1667_s3 = inlined_call_operand.vmem [shape: bf16[32,32], index: 3, kind: input, shape index: {}]   ;;  %s1668_s5 = inlined_call_operand.vmem [shape: bf16[32,784], index: 5, kind: input, shape index: {}]   ;;  %s1669_s6 = inlined_call_operand.vmem [shape: f32[1,784], index: 6, kind: input, shape index: {}]   ;;  %s1670_s7 = inlined_call_operand.vmem [shape: bf16[16,784], index: 7, kind: output, shape index: {}]  }
   0x1   :  { %v1176_v0 = vld [vmem:[%s1663_s1 + $0x38] sm:$0xff]  ;;  %v1175_v4 = vld [vmem:[%s1663_s1 + $0x30] sm:$0xff]  ;;  %v1174_v8 = vld [vmem:[%s1663_s1 + $0x28] sm:$0xff] }
   0x2   :  { %v1184_v1 = vld [vmem:[%s1663_s1 + $0x78] sm:$0xff]  ;;  %448 = vmatpush.bf16.msra.mxu0 %v1176_v0  ;;  %v1183_v5 = vld [vmem:[%s1663_s1 + $0x70] sm:$0xff]  ;;  %v1182_v9 = vld [vmem:[%s1663_s1 + $0x68] sm:$0xff] }
   0x3   :  { %v1192_v2 = vld [vmem:[%s1663_s1 + $0xb8] sm:$0xff]  ;;  %462 = vmatpush.bf16.msra.mxu1 %v1184_v1  ;;  %v1191_v6 = vld [vmem:[%s1663_s1 + $0xb0] sm:$0xff]  ;;  %v1190_v10 = vld [vmem:[%s1663_s1 + $0xa8] sm:$0xff] }
   0x4   :  { %v1200_v3 = vld [vmem:[%s1663_s1 + $0xf8] sm:$0xff]  ;;  %476 = vmatpush.bf16.msra.mxu2 %v1192_v2  ;;  %v1199_v7 = vld [vmem:[%s1663_s1 + $0xf0] sm:$0xff]  ;;  %v1198_v11 = vld [vmem:[%s1663_s1 + $0xe8] sm:$0xff] }
   0x5   :  { %490 = vmatpush.bf16.msra.mxu3 %v1200_v3  ;;  %v1173_v12 = vld [vmem:[%s1663_s1 + $0x20] sm:$0xff]  ;;  %v1172_v16 = vld [vmem:[%s1663_s1 + $0x18] sm:$0xff]  ;;  %v1171_v20 = vld [vmem:[%s1663_s1 + $0x10] sm:$0xff] }
   0x6   :  { %449 = vmatpush.bf16.msra.mxu0 %v1175_v4  ;;  %v1181_v13 = vld [vmem:[%s1663_s1 + $0x60] sm:$0xff]  ;;  %v1180_v17 = vld [vmem:[%s1663_s1 + $0x58] sm:$0xff]  ;;  %v1179_v21 = vld [vmem:[%s1663_s1 + $0x50] sm:$0xff] }
   0x7   :  { %463 = vmatpush.bf16.msra.mxu1 %v1183_v5  ;;  %v1189_v14 = vld [vmem:[%s1663_s1 + $0xa0] sm:$0xff]  ;;  %v1188_v18 = vld [vmem:[%s1663_s1 + $0x98] sm:$0xff]  ;;  %v1187_v22 = vld [vmem:[%s1663_s1 + $0x90] sm:$0xff] }
   0x8   :  { %477 = vmatpush.bf16.msra.mxu2 %v1191_v6  ;;  %v1197_v15 = vld [vmem:[%s1663_s1 + $0xe0] sm:$0xff]  ;;  %v1196_v19 = vld [vmem:[%s1663_s1 + $0xd8] sm:$0xff]  ;;  %v1195_v23 = vld [vmem:[%s1663_s1 + $0xd0] sm:$0xff] }
   0x9   :  { %491 = vmatpush.bf16.msra.mxu3 %v1199_v7  ;;  %v1170_v24 = vld [vmem:[%s1663_s1 + $0x8] sm:$0xff]  ;;  %v1169_v28 = vld [vmem:[%s1663_s1] sm:$0xff]  ;;  %v34_v31 = vld [vmem:[%s1665_s0 + $0x38] sm:$0xff] }
   0xa   :  { %450 = vmatpush.bf16.msra.mxu0 %v1174_v8  ;;  %v1178_v25 = vld [vmem:[%s1663_s1 + $0x48] sm:$0xff]  ;;  %v1177_v29 = vld [vmem:[%s1663_s1 + $0x40] sm:$0xff]  ;;  %v1208_v34 = vld [vmem:[%s1663_s1 + $0x138] sm:$0xff] }
   0xb   :  { %464 = vmatpush.bf16.msra.mxu1 %v1182_v9  ;;  %v1186_v26 = vld [vmem:[%s1663_s1 + $0x88] sm:$0xff]  ;;  %v27_v30 = vld [vmem:[%s1665_s0] sm:$0xff]  ;;  %v1216_v35 = vld [vmem:[%s1663_s1 + $0x178] sm:$0xff] }
   0xc   :  { %478 = vmatpush.bf16.msra.mxu2 %v1190_v10  ;;  %v1194_v27 = vld [vmem:[%s1663_s1 + $0xc8] sm:$0xff]  ;;  %v35_v33 = vld [vmem:[%s1665_s0 + $0x40] sm:$0xff]  ;;  %v29_v38 = vld [vmem:[%s1665_s0 + $0x10] sm:$0xff]  ;;  %v41_v40 = vpack.c.bf16 %v34_v31, %v27_v30 }
   0xd   :  { %492 = vmatpush.bf16.msra.mxu3 %v1198_v11  ;;  %v28_v32 = vld [vmem:[%s1665_s0 + $0x8] sm:$0xff]  ;;  %v1185_v36 = vld [vmem:[%s1663_s1 + $0x80] sm:$0xff]  ;;  %v30_v41 = vld [vmem:[%s1665_s0 + $0x18] sm:$0xff] }
   0xe   :  { %451 = vmatpush.bf16.msra.mxu0 %v1173_v12  ;;  %v1193_v37 = vld [vmem:[%s1663_s1 + $0xc0] sm:$0xff]  ;;  %v36_v39 = vld [vmem:[%s1665_s0 + $0x48] sm:$0xff]  ;;  %v37_v42 = vld [vmem:[%s1665_s0 + $0x50] sm:$0xff]  ;;  %v42_v43 = vpack.c.bf16 %v35_v33, %v28_v32 }
   0xf   :  { %465 = vmatpush.bf16.msra.mxu1 %v1181_v13  ;;  %v1217_v44 = vld [vmem:[%s1663_s1 + $0x180] sm:$0xff]  ;;  %v1207_v45 = vld [vmem:[%s1663_s1 + $0x130] sm:$0xff]  ;;  %v43_v47 = vpack.c.bf16 %v36_v39, %v29_v38  ;;  %v44_v48 = vpack.c.bf16 %v37_v42, %v30_v41  ;;  %v1206_v49 = vld [vmem:[%s1663_s1 + $0x128] sm:$0xff] }
  0x10   :  { %479 = vmatpush.bf16.msra.mxu2 %v1189_v14  ;;  %v1215_v46 = vld [vmem:[%s1663_s1 + $0x170] sm:$0xff]  ;;  %v1214_v50 = vld [vmem:[%s1663_s1 + $0x168] sm:$0xff]  ;;  %v1205_v51 = vld [vmem:[%s1663_s1 + $0x120] sm:$0xff] }
  0x11   :  { %493 = vmatpush.bf16.msra.mxu3 %v1197_v15  ;;  %v1213_v52 = vld [vmem:[%s1663_s1 + $0x160] sm:$0xff]  ;;  %v1204_v53 = vld [vmem:[%s1663_s1 + $0x118] sm:$0xff]  ;;  %v33_v55 = vld [vmem:[%s1665_s0 + $0x30] sm:$0xff] }
  0x12   :  { %452 = vmatpush.bf16.msra.mxu0 %v1172_v16  ;;  %v1212_v54 = vld [vmem:[%s1663_s1 + $0x158] sm:$0xff]  ;;  %v40_v56 = vld [vmem:[%s1665_s0 + $0x68] sm:$0xff]  ;;  %v1203_v57 = vld [vmem:[%s1663_s1 + $0x110] sm:$0xff] }
  0x13   :  { %466 = vmatpush.bf16.msra.mxu1 %v1180_v17  ;;  %v1211_v58 = vld [vmem:[%s1663_s1 + $0x150] sm:$0xff]  ;;  %v47_v59 = vpack.c.bf16 %v40_v56, %v33_v55  ;;  %v1202_v60 = vld [vmem:[%s1663_s1 + $0x108] sm:$0xff]  ;;  %v1201_v62 = vld [vmem:[%s1663_s1 + $0x100] sm:$0xff] }
  0x14   :  { %480 = vmatpush.bf16.msra.mxu2 %v1188_v18  ;;  %v1210_v61 = vld [vmem:[%s1663_s1 + $0x148] sm:$0xff]  ;;  %v1209_v63 = vld [vmem:[%s1663_s1 + $0x140] sm:$0xff]  ;;  %v38_v1 = vld [vmem:[%s1665_s0 + $0x58] sm:$0xff] }
  0x15   :  { %494 = vmatpush.bf16.msra.mxu3 %v1196_v19  ;;  %v31_v0 = vld [vmem:[%s1665_s0 + $0x20] sm:$0xff]  ;;  %v32_v2 = vld [vmem:[%s1665_s0 + $0x28] sm:$0xff]  ;;  %v1136_v12 = vld [vmem:[%s1668_s5 + $0x38] sm:$0xf] }
  0x16   :  { %453 = vmatpush.bf16.msra.mxu0 %v1171_v20  ;;  %v39_v3 = vld [vmem:[%s1665_s0 + $0x60] sm:$0xff]  ;;  %v45_v4 = vpack.c.bf16 %v38_v1, %v31_v0  ;;  %v1219_v6 = vld [vmem:[%s1667_s3 + $0x8] sm:$0xff]  ;;  %v1230_v13 = vld [vmem:[%s1668_s5 + $0x50] sm:$0xf0] }
  0x17   :  { %467 = vmatpush.bf16.msra.mxu1 %v1179_v21  ;;  %v46_v5 = vpack.c.bf16 %v39_v3, %v32_v2  ;;  %v1218_v10 = vld [vmem:[%s1667_s3] sm:$0xff]  ;;  %v1227_v14 = vld [vmem:[%s1668_s5 + $0x3c] sm:$0xf]  ;;  %v1137_v15 = vor.u32 %v1230_v13, %v1136_v12  ;;  %v1138_v16 = vld [vmem:[%s1668_s5 + $0x54] sm:$0xf0] }
  0x18   :  { %481 = vmatpush.bf16.msra.mxu2 %v1187_v22  ;;  %v1234_v11 = vld [vmem:[%s1664_s2] ss:$0 sm:$0xff]  ;;  %v1141_v18 = vor.u32 %v1227_v14, %v1138_v16  ;;  %v1228_v55 = vld [vmem:[%s1668_s5 + $0x44] sm:$0xf]  ;;  %v1152_v0 = vld [vmem:[%s1668_s5 + $0x48] sm:$0xf] }
  0x19   :  { %495 = vmatpush.bf16.msra.mxu3 %v1195_v23  ;;  %v1146_v56 = vld [vmem:[%s1668_s5 + $0x5c] sm:$0xf0]  ;;  %v1232_v1 = vld [vmem:[%s1668_s5 + $0x60] sm:$0xf0]  ;;  %v1229_v2 = vld [vmem:[%s1668_s5 + $0x4c] sm:$0xf] }
  0x1a   :  { %454 = vmatpush.bf16.msra.mxu0 %v1170_v24  ;;  %v1153_v3 = vor.u32 %v1232_v1, %v1152_v0  ;;  %v1126_v13 = vld [vmem:[%s1668_s5 + $0x2c] sm:$0xf0]  ;;  %v1132_v14 = vld [vmem:[%s1668_s5 + $0x18] sm:$0xf] }
  0x1b   :  { %468 = vmatpush.bf16.msra.mxu1 %v1178_v25 }
  0x1c   :  { %482 = vmatpush.bf16.msra.mxu2 %v1186_v26 }
  0x1d   :  { %496 = vmatpush.bf16.msra.mxu3 %v1194_v27 }
  0x1e   :  { %455 = vmatpush.bf16.msra.mxu0 %v1169_v28 }
  0x1f   :  { %469 = vmatpush.bf16.msra.mxu1 %v1177_v29 }
  0x20   :  { %483 = vmatpush.bf16.msra.mxu2 %v1185_v36 }
  0x21   :  { %497 = vmatpush.bf16.msra.mxu3 %v1193_v37  ;;  %456 = vmatmul.bf16.vlgmr.msra.gmra.mxu0 %v41_v40 }
  0x22   :  { %504 = vmatpush.bf16.msrb.mxu0 %v1208_v34  ;;  %470 = vmatmul.bf16.vlgmr.msra.gmra.mxu1 %v42_v43 }
  0x23   :  { %518 = vmatpush.bf16.msrb.mxu1 %v1216_v35  ;;  %484 = vmatmul.bf16.vlgmr.msra.gmra.mxu2 %v43_v47  ;;  %v1231_v47 = vld [vmem:[%s1668_s5 + $0x58] sm:$0xf0] }
  0x24   :  { %539 = vmatpush.bf16.msrb.mxu2 %v1217_v44  ;;  %498 = vmatmul.bf16.vlgmr.msra.gmra.mxu3 %v44_v48  ;;  %v1108_v48 = vld [vmem:[%s1668_s5] sm:$0xf] }
  0x25   :  { %579 = vmatpush.bf16.msrb.mxu3 %v1219_v6  ;;  %v1233_v6 = vld [vmem:[%s1668_s5 + $0x68] sm:$0xf0] }
  0x26   :  { %505 = vmatpush.bf16.msrb.mxu0 %v1207_v45 }
  0x27   :  { %519 = vmatpush.bf16.msrb.mxu1 %v1215_v46  ;;  %v1144_v46 = vld [vmem:[%s1668_s5 + $0x40] sm:$0xf] }
  0x28   :  { %703 = vmatpush.bf16.msra.mxu2 %v1137_v15  ;;  %v1226_v15 = vld [vmem:[%s1668_s5 + $0x30] sm:$0xf0] }
  0x29   :  { %580 = vmatpush.bf16.msrb.mxu3 %v1218_v10  ;;  %v1225_v10 = vld [vmem:[%s1668_s5 + $0x28] sm:$0xf0] }
  0x2a   :  { %506 = vmatpush.bf16.msrb.mxu0 %v1206_v49  ;;  %v1145_v49 = vor.u32 %v1231_v47, %v1144_v46 }
  0x2b   :  { %520 = vmatpush.bf16.msrb.mxu1 %v1214_v50  ;;  %v1223_v50 = vld [vmem:[%s1668_s5 + $0x18] sm:$0xf0] }
  0x2d   :  { %717 = vmatpush.bf16.msra.mxu3 %v1141_v18 }
  0x2e   :  { %507 = vmatpush.bf16.msrb.mxu0 %v1205_v51  ;;  %v1220_v51 = vld [vmem:[%s1668_s5 + $0x4] sm:$0xf] }
  0x2f   :  { %521 = vmatpush.bf16.msrb.mxu1 %v1213_v52  ;;  %v1110_v52 = vld [vmem:[%s1668_s5 + $0x1c] sm:$0xf0] }
  0x32   :  { %508 = vmatpush.bf16.msrb.mxu0 %v1204_v53  ;;  %v1109_v53 = vor.u32 %v1223_v50, %v1108_v48 }
  0x33   :  { %522 = vmatpush.bf16.msrb.mxu1 %v1212_v54  ;;  %1096 = vmatmul.msk.bf16.vlgmr.msrb.gmra.mxu2 %vm444_vm0, %v47_v59  ;;  %v1113_v54 = vor.u32 %v1220_v51, %v1110_v52  ;;  %v1224_v59 = vld [vmem:[%s1668_s5 + $0x20] sm:$0xf0] }
  0x34   :  { %704 = vmatpush.bf16.msra.mxu2 %v1109_v53 }
  0x35   :  { %718 = vmatpush.bf16.msra.mxu3 %v1113_v54 }
  0x36   :  { %509 = vmatpush.bf16.msrb.mxu0 %v1203_v57  ;;  %v1149_v57 = vor.u32 %v1228_v55, %v1146_v56 }
  0x37   :  { %523 = vmatpush.bf16.msrb.mxu1 %v1211_v58  ;;  %v1116_v58 = vld [vmem:[%s1668_s5 + $0x8] sm:$0xf] }
  0x38   :  { %759 = vmatpush.bf16.msrb.mxu2 %v1153_v3 }
  0x3a   :  { %510 = vmatpush.bf16.msrb.mxu0 %v1202_v60  ;;  %v1221_v60 = vld [vmem:[%s1668_s5 + $0xc] sm:$0xf] }
  0x3b   :  { %524 = vmatpush.bf16.msrb.mxu1 %v1210_v61  ;;  %v1117_v61 = vor.u32 %v1224_v59, %v1116_v58 }
  0x3e   :  { %511 = vmatpush.bf16.msrb.mxu0 %v1201_v62  ;;  %v1118_v62 = vld [vmem:[%s1668_s5 + $0x24] sm:$0xf0] }
  0x3f   :  { %525 = vmatpush.bf16.msrb.mxu1 %v1209_v63  ;;  %v1121_v63 = vor.u32 %v1221_v60, %v1118_v62 }
  0x41   :  { %512 = vmatmul.bf16.vlgmr.msrb.gmra.mxu0 %v45_v4  ;;  %v1154_v4 = vld [vmem:[%s1668_s5 + $0x64] sm:$0xf0] }
  0x42   :  { %526 = vmatmul.bf16.vlgmr.msrb.gmra.mxu1 %v46_v5  ;;  %731 = vmatpush.bf16.msra.mxu0 %v1145_v49  ;;  %v1160_v5 = vld [vmem:[%s1668_s5 + $0x50] sm:$0xf] }
  0x43   :  { %745 = vmatpush.bf16.msra.mxu1 %v1149_v57 }
  0x46   :  { %732 = vmatpush.bf16.msra.mxu0 %v1117_v61 }
  0x47   :  { %746 = vmatpush.bf16.msra.mxu1 %v1121_v63 }
  0x9e   :  { %v457_v7 = vpop.f32.mrf.mxu0 }
  0x9f   :  { %v471_v8 = vpop.f32.mrf.mxu1  ;;  %v458_v17 = vadd.f32 %v1234_v11, %v457_v7  ;;  %v1157_v7 = vor.u32 %v1229_v2, %v1154_v4 }
  0xa1   :  { %v472_v22 = vadd.f32 %v471_v8, %v458_v17  ;;  %v1161_v8 = vor.u32 %v1233_v6, %v1160_v5  ;;  %v1133_v17 = vor.u32 %v1226_v15, %v1132_v14 }
  0xa3   :  { %787 = vmatpush.bf16.msrb.mxu0 %v1161_v8 }
  0xa6   :  { %v485_v9 = vpop.f32.mrf.mxu2  ;;  %v459_v19 = vpop.f32.mrf.mxu0 }
  0xa7   :  { %v473_v20 = vpop.f32.mrf.mxu1  ;;  %v499_v23 = vpop.f32.mrf.mxu3  ;;  %v460_v24 = vadd.f32 %v1234_v11, %v459_v19  ;;  %v486_v25 = vadd.f32 %v485_v9, %v472_v22  ;;  %v1124_v9 = vld [vmem:[%s1668_s5 + $0x10] sm:$0xf]  ;;  %v1222_v11 = vld [vmem:[%s1668_s5 + $0x14] sm:$0xf]  ;;  %788 = vmatpush.bf16.msrb.mxu0 %v1133_v17  ;;  %v1235_v19 = vld [vmem:[%s1666_s4] ss:$0 sm:$0xff] }
  0xa8   :  { %v1125_v12 = vor.u32 %v1225_v10, %v1124_v9  ;;  %v1129_v16 = vor.u32 %v1222_v11, %v1126_v13 }
  0xa9   :  { %v474_v26 = vadd.f32 %v473_v20, %v460_v24  ;;  %v500_v29 = vadd.f32 %v499_v23, %v486_v25 }
  0xaa   :  { %760 = vmatpush.bf16.msrb.mxu2 %v1125_v12 }
  0xae   :  { %v487_v21 = vpop.f32.mrf.mxu2 }
  0xaf   :  { %v488_v31 = vadd.f32 %v487_v21, %v474_v26  ;;  %v501_v33 = vpop.f32.mrf.mxu3  ;;  %v1628_v26 = vld [vmem:[%s1669_s6] sm:$0x7f] }
  0xb0   :  { %v614_v57 = vperm.slane %v1628_v26, 6  ;;  %v612_v6 = vperm.slane %v1628_v26, 4 }
  0xb1   :  { %v502_v34 = vadd.f32 %v501_v33, %v488_v31  ;;  %v608_v33 = vperm.slane %v1628_v26, 0 }
  0xb6   :  { %v541_v30 = vpop.f32.mrf.mxu2 }
  0xbe   :  { %v513_v27 = vpop.f32.mrf.mxu0  ;;  %v543_v41 = vpop.f32.mrf.mxu2 }
  0xbf   :  { %v527_v28 = vpop.f32.mrf.mxu1  ;;  %v514_v32 = vadd.f32 %v513_v27, %v500_v29  ;;  %v610_v27 = vperm.slane %v1628_v26, 2 }
  0xc1   :  { %v528_v35 = vadd.f32 %v527_v28, %v514_v32  ;;  %v611_v28 = vperm.slane %v1628_v26, 3 }
  0xc3   :  { %v542_v39 = vadd.f32 %v541_v30, %v528_v35 }
  0xc5   :  { %v546_v43 = vmax.f32 %v542_v39, 0.0 }
  0xc6   :  { %v515_v36 = vpop.f32.mrf.mxu0 }
  0xc7   :  { %v516_v37 = vadd.f32 %v515_v36, %v502_v34  ;;  %v529_v38 = vpop.f32.mrf.mxu1  ;;  %v609_v34 = vperm.slane %v1628_v26, 1 }
  0xc9   :  { %v530_v40 = vadd.f32 %v529_v38, %v516_v37 }
  0xcb   :  { %v544_v42 = vadd.f32 %v543_v41, %v530_v40 }
  0xcd   :  { %v547_v44 = vmax.f32 %v544_v42, 0.0 }
  0xcf   :  { %v548_v45 = vpack.c.bf16 %v547_v44, %v546_v43 }
  0xd1   :  { %1105 = vmatmul.msk.bf16.vlgmr.msrb.gmra.mxu3 %vm569_vm1, %v548_v45 }
  0xd2   :  { %773 = vmatpush.bf16.msrb.mxu3 %v1157_v7  ;;  %v613_v7 = vperm.slane %v1628_v26, 5 }
  0xd6   :  { %774 = vmatpush.bf16.msrb.mxu3 %v1129_v16 }
 0x154   :  { %v582_v18 = vpop.f32.mrf.mxu3 }
 0x155   :  { %v583_v20 = vadd.f32 %v1235_v19, %v582_v18 }
 0x157   :  { %v587_v23 = vmax.f32 %v583_v20, 0.0 }
 0x15c   :  { %v584_v21 = vpop.f32.mrf.mxu3 }
 0x15d   :  { %v585_v22 = vadd.f32 %v1235_v19, %v584_v21 }
 0x15f   :  { %v588_v24 = vmax.f32 %v585_v22, 0.0 }
 0x161   :  { %v589_v25 = vpack.c.bf16 %v588_v24, %v587_v23 }
 0x163   :  { %1162 = vmatmul.msk.bf16.vlgmr.msra.gmra.mxu2 %vm569_vm1, %v589_v25  ;;  %1163 = vmatmul.msk.bf16.vlgmr.msra.gmra.mxu3 %vm569_vm1, %v589_v25 }
 0x164   :  { %1164 = vmatmul.msk.bf16.vlgmr.msra.gmra.mxu0 %vm569_vm1, %v589_v25  ;;  %1165 = vmatmul.msk.bf16.vlgmr.msra.gmra.mxu1 %vm569_vm1, %v589_v25 }
 0x173   :  { %1166 = vmatmul.msk.bf16.vlgmr.msrb.gmra.mxu2 %vm569_vm1, %v589_v25  ;;  %1167 = vmatmul.msk.bf16.vlgmr.msrb.gmra.mxu3 %vm569_vm1, %v589_v25 }
 0x174   :  { %1168 = vmatmul.msk.bf16.vlgmr.msrb.gmra.mxu0 %vm569_vm1, %v589_v25 }
 0x1e1   :  { %v734_v29 = vpop.f32.mrf.mxu0  ;;  %v748_v30 = vpop.f32.mrf.mxu1 }
 0x1e2   :  { %v735_v31 = vadd.f32 %v734_v29, %v610_v27  ;;  %v749_v32 = vadd.f32 %v748_v30, %v611_v28 }
 0x1e4   :  { %v797_v35 = vsub.f32 0.0, %v735_v31  ;;  %v798_v36 = vsub.f32 0.0, %v749_v32 }
 0x1e6   :  { %v813_v37 = vmul.f32 1.442695, %v797_v35  ;;  %v815_v38 = vmul.f32 1.442695, %v798_v36  ;;  %v706_v39 = vpop.f32.mrf.mxu2  ;;  %v720_v40 = vpop.f32.mrf.mxu3 }
 0x1e7   :  { %v707_v41 = vadd.f32 %v706_v39, %v608_v33  ;;  %v721_v42 = vadd.f32 %v720_v40, %v609_v34 }
 0x1e8   :  { %1236 = vpow2.f32 %v813_v37 }
 0x1e9   :  { %1238 = vpow2.f32 %v815_v38  ;;  %v795_v43 = vsub.f32 0.0, %v707_v41  ;;  %v796_v44 = vsub.f32 0.0, %v721_v42  ;;  %v736_v45 = vpop.f32.mrf.mxu0  ;;  %v750_v46 = vpop.f32.mrf.mxu1 }
 0x1ea   :  { %v737_v47 = vadd.f32 %v736_v45, %v610_v27  ;;  %v751_v48 = vadd.f32 %v750_v46, %v611_v28 }
 0x1eb   :  { %v809_v49 = vmul.f32 1.442695, %v795_v43  ;;  %v811_v50 = vmul.f32 1.442695, %v796_v44 }
 0x1ec   :  { %v804_v51 = vsub.f32 0.0, %v737_v47  ;;  %v805_v52 = vsub.f32 0.0, %v751_v48 }
 0x1ed   :  { %1240 = vpow2.f32 %v809_v49 }
 0x1ee   :  { %v1237_v53 = vpop.eup %1236  ;;  %1242 = vpow2.f32 %v811_v50  ;;  %v827_v54 = vmul.f32 1.442695, %v804_v51  ;;  %v708_v55 = vpop.f32.mrf.mxu2  ;;  %v829_v60 = vmul.f32 1.442695, %v805_v52 }
 0x1ef   :  { %v722_v56 = vpop.f32.mrf.mxu3  ;;  %v1239_v58 = vpop.eup %1238  ;;  %v839_v59 = vadd.f32 1.0, %v1237_v53  ;;  %v709_v61 = vadd.f32 %v708_v55, %v608_v33 }
 0x1f0   :  { %v723_v62 = vadd.f32 %v722_v56, %v609_v34  ;;  %v840_v63 = vadd.f32 1.0, %v1239_v58  ;;  %1244 = vpow2.f32 %v827_v54 }
 0x1f1   :  { %1246 = vrcp.f32 %v839_v59  ;;  %v802_v0 = vsub.f32 0.0, %v709_v61  ;;  %v790_v2 = vpop.f32.mrf.mxu0 }
 0x1f2   :  { %v803_v1 = vsub.f32 0.0, %v723_v62  ;;  %1248 = vrcp.f32 %v840_v63  ;;  %v791_v3 = vadd.f32 %v790_v2, %v614_v57 }
 0x1f3   :  { %v1241_v4 = vpop.eup %1240  ;;  %1250 = vpow2.f32 %v829_v60  ;;  %v823_v5 = vmul.f32 1.442695, %v802_v0 }
 0x1f4   :  { %v1243_v8 = vpop.eup %1242  ;;  %v837_v9 = vadd.f32 1.0, %v1241_v4  ;;  %v825_v10 = vmul.f32 1.442695, %v803_v1  ;;  %v801_v11 = vsub.f32 0.0, %v791_v3 }
 0x1f5   :  { %v838_v12 = vadd.f32 1.0, %v1243_v8  ;;  %1252 = vpow2.f32 %v823_v5 }
 0x1f6   :  { %v1245_v13 = vpop.eup %1244  ;;  %1254 = vrcp.f32 %v837_v9  ;;  %v821_v14 = vmul.f32 1.442695, %v801_v11  ;;  %v762_v15 = vpop.f32.mrf.mxu2 }
 0x1f7   :  { %v776_v16 = vpop.f32.mrf.mxu3  ;;  %v1247_v17 = vpop.eup %1246  ;;  %1256 = vrcp.f32 %v838_v12  ;;  %v846_v18 = vadd.f32 1.0, %v1245_v13  ;;  %v763_v19 = vadd.f32 %v762_v15, %v612_v6 }
 0x1f8   :  { %v777_v20 = vadd.f32 %v776_v16, %v613_v7  ;;  %v1249_v21 = vpop.eup %1248  ;;  %v867_v22 = vmin.f32 %v1247_v17, 1.0  ;;  %1258 = vpow2.f32 %v825_v10 }
 0x1f9   :  { %v1251_v23 = vpop.eup %1250  ;;  %v868_v24 = vmin.f32 %v1249_v21, 1.0  ;;  %1260 = vrcp.f32 %v846_v18  ;;  %v799_v25 = vsub.f32 0.0, %v763_v19  ;;  %v792_v27 = vpop.f32.mrf.mxu0 }
 0x1fa   :  { %v800_v26 = vsub.f32 0.0, %v777_v20  ;;  %v847_v28 = vadd.f32 1.0, %v1251_v23  ;;  %1262 = vpow2.f32 %v821_v14  ;;  %v793_v29 = vadd.f32 %v792_v27, %v614_v57 }
 0x1fb   :  { %v1253_v30 = vpop.eup %1252  ;;  %v880_v31 = vpack.c.bf16 %v868_v24, %v867_v22  ;;  %v817_v32 = vmul.f32 1.442695, %v799_v25 }
 0x1fc   :  { %v819_v33 = vmul.f32 1.442695, %v800_v26  ;;  %v1255_v34 = vpop.eup %1254  ;;  %1264 = vrcp.f32 %v847_v28  ;;  %v844_v35 = vadd.f32 1.0, %v1253_v30  ;;  %v808_v36 = vsub.f32 0.0, %v793_v29 }
 0x1fd   :  { %v1257_v37 = vpop.eup %1256  ;;  %888 = vst [vmem:[%s1670_s7 + $0x8] sm:$0xff] %v880_v31  ;;  %v865_v38 = vmin.f32 %v1255_v34, 1.0  ;;  %1266 = vpow2.f32 %v817_v32 }
 0x1fe   :  { %v1259_v39 = vpop.eup %1258  ;;  %v866_v40 = vmin.f32 %v1257_v37, 1.0  ;;  %1268 = vrcp.f32 %v844_v35  ;;  %v835_v41 = vmul.f32 1.442695, %v808_v36  ;;  %v764_v42 = vpop.f32.mrf.mxu2 }
 0x1ff   :  { %v778_v43 = vpop.f32.mrf.mxu3  ;;  %v1261_v44 = vpop.eup %1260  ;;  %v845_v45 = vadd.f32 1.0, %v1259_v39  ;;  %1270 = vpow2.f32 %v819_v33  ;;  %v765_v46 = vadd.f32 %v764_v42, %v612_v6 }
 0x200   :  { %v779_v47 = vadd.f32 %v778_v43, %v613_v7  ;;  %v1263_v48 = vpop.eup %1262  ;;  %v879_v49 = vpack.c.bf16 %v866_v40, %v865_v38  ;;  %v874_v50 = vmin.f32 %v1261_v44, 1.0  ;;  %1272 = vpow2.f32 %v835_v41 }
 0x201   :  { %1274 = vrcp.f32 %v845_v45  ;;  %v843_v51 = vadd.f32 1.0, %v1263_v48  ;;  %v806_v52 = vsub.f32 0.0, %v765_v46 }
 0x202   :  { %v807_v53 = vsub.f32 0.0, %v779_v47  ;;  %v1265_v54 = vpop.eup %1264  ;;  %887 = vst [vmem:[%s1670_s7] sm:$0xff] %v879_v49 }
 0x203   :  { %v1267_v55 = vpop.eup %1266  ;;  %v875_v56 = vmin.f32 %v1265_v54, 1.0  ;;  %1276 = vrcp.f32 %v843_v51  ;;  %v831_v57 = vmul.f32 1.442695, %v806_v52 }
 0x204   :  { %v833_v58 = vmul.f32 1.442695, %v807_v53  ;;  %v1269_v59 = vpop.eup %1268  ;;  %v841_v60 = vadd.f32 1.0, %v1267_v55 }
 0x205   :  { %v1271_v61 = vpop.eup %1270  ;;  %v884_v62 = vpack.c.bf16 %v875_v56, %v874_v50  ;;  %1278 = vpow2.f32 %v831_v57  ;;  %v872_v0 = vmin.f32 %v1269_v59, 1.0 }
 0x206   :  { %v1273_v63 = vpop.eup %1272  ;;  %1280 = vrcp.f32 %v841_v60  ;;  %v842_v1 = vadd.f32 1.0, %v1271_v61 }
 0x207   :  { %v1275_v2 = vpop.eup %1274  ;;  %893 = vst [vmem:[%s1670_s7 + $0x24] sm:$0xff] %v884_v62  ;;  %v850_v3 = vadd.f32 1.0, %v1273_v63  ;;  %1282 = vpow2.f32 %v833_v58 }
 0x208   :  { %v873_v4 = vmin.f32 %v1275_v2, 1.0  ;;  %1284 = vrcp.f32 %v842_v1 }
 0x209   :  { %v1277_v5 = vpop.eup %1276  ;;  %1286 = vrcp.f32 %v850_v3 }
 0x20a   :  { %v883_v6 = vpack.c.bf16 %v873_v4, %v872_v0  ;;  %v871_v7 = vmin.f32 %v1277_v5, 1.0 }
 0x20b   :  { %v1279_v8 = vpop.eup %1278 }
 0x20c   :  { %v1281_v9 = vpop.eup %1280  ;;  %892 = vst [vmem:[%s1670_s7 + $0x1c] sm:$0xff] %v883_v6  ;;  %v882_v10 = vpack.c.bf16 %v871_v7, %v871_v7  ;;  %v848_v11 = vadd.f32 1.0, %v1279_v8 }
 0x20d   :  { %v1283_v12 = vpop.eup %1282  ;;  %v869_v13 = vmin.f32 %v1281_v9, 1.0 }
 0x20e   :  { %v1285_v14 = vpop.eup %1284  ;;  %891 = vst.msk [vmem:[%s1670_s7 + $0x18] sm:$0xf] %vm890_vm2, %v882_v10  ;;  %1288 = vrcp.f32 %v848_v11  ;;  %v849_v15 = vadd.f32 1.0, %v1283_v12 }
 0x20f   :  { %v1287_v16 = vpop.eup %1286  ;;  %v870_v17 = vmin.f32 %v1285_v14, 1.0 }
 0x210   :  { %v878_v18 = vmin.f32 %v1287_v16, 1.0  ;;  %1290 = vrcp.f32 %v849_v15 }
 0x211   :  { %v881_v19 = vpack.c.bf16 %v870_v17, %v869_v13 }
 0x212   :  { %v886_v20 = vpack.c.bf16 %v878_v18, %v878_v18 }
 0x213   :  { %889 = vst [vmem:[%s1670_s7 + $0x10] sm:$0xff] %v881_v19 }
 0x214   :  { %v1289_v21 = vpop.eup %1288  ;;  %895 = vst.msk [vmem:[%s1670_s7 + $0x34] sm:$0xf] %vm890_vm2, %v886_v20 }
 0x215   :  { %v876_v22 = vmin.f32 %v1289_v21, 1.0 }
 0x216   :  { %v1291_v23 = vpop.eup %1290 }
 0x217   :  { %v877_v24 = vmin.f32 %v1291_v23, 1.0 }
 0x219   :  { %v885_v25 = vpack.c.bf16 %v877_v24, %v876_v22 }
 0x21b   :  { %894 = vst [vmem:[%s1670_s7 + $0x2c] sm:$0xff] %v885_v25 }

</bundles_post_ra>
